<compile_context>
chip_gen: v7x
topology: tpu7x:2x2x1
jax: 0.10.0
libtpu: 0.0.40
codegen_flags: <defaults>
</compile_context>

<pallas_src>
import jax
import jax.numpy as jnp
from jax.scipy.linalg import block_diag
from jax.experimental import pallas as pl
from jax.experimental.pallas import tpu as pltpu

STATE_DIM = 30
ACTION_DIM = 15
OUT_LANES = 128          # lane-dense fused output slab width
H1 = 128                 # hidden width of each branch at layers 1/2
H2 = 64                  # hidden width of each branch at layer 3


def _actor_critic_kernel(x_ref, w1, b1, w2, b2, w3, b3, w4, b4, out_ref):
    x = x_ref[...]                                                  # (TM, 30)

    # Layer 1 (fused actor|critic): (TM, 256), ReLU on both halves.
    h = jnp.dot(x, w1[...], preferred_element_type=jnp.float32) + b1[...]
    h = jnp.maximum(h, 0.0)

    # Layer 2 (block-diagonal): actor half -> Tanh, critic half -> ReLU.
    h2 = jnp.dot(h, w2[...], preferred_element_type=jnp.float32) + b2[...]
    h = jnp.concatenate(
        [jnp.tanh(h2[:, :H1]), jnp.maximum(h2[:, H1:], 0.0)], axis=1)

    # Layer 3 (block-diagonal): ReLU on both halves -> (TM, 128).
    h = jnp.dot(h, w3[...], preferred_element_type=jnp.float32) + b3[...]
    h = jnp.maximum(h, 0.0)

    # Fused heads, zero-padded to 128 lanes:
    #   cols 0..14 = actor logits, col 15 = critic value, cols 16.. = 0.
    z = jnp.dot(h, w4[...], preferred_element_type=jnp.float32) + b4[...]

    col = jax.lax.broadcasted_iota(jnp.int32, z.shape, 1)
    is_logit = col < ACTION_DIM

    # Masked softmax over the logit lanes only.
    m = jnp.max(jnp.where(is_logit, z, -jnp.inf), axis=-1, keepdims=True)
    e = jnp.exp(jnp.where(is_logit, z - m, -jnp.inf))               # masked lanes -> 0
    denom = jnp.sum(e, axis=-1, keepdims=True)
    probs = e * pl.reciprocal(denom, approx=True)

    out_ref[...] = jnp.where(
        is_logit, probs, jnp.where(col == ACTION_DIM, z, 0.0))


def _fuse_params(params):
    """Build the fused/block-diagonal weights used by the kernel."""
    (wa1, ba1), (wa2, ba2), (wa3, ba3), (wa4, ba4), \
        (wc1, bc1), (wc2, bc2), (wc3, bc3), (wc4, bc4) = params

    w1 = jnp.concatenate([wa1, wc1], axis=1)            # (30, 256)
    b1 = jnp.concatenate([ba1, bc1], axis=1)            # (1, 256)

    w2 = block_diag(wa2, wc2)                           # (256, 256)
    b2 = jnp.concatenate([ba2, bc2], axis=1)            # (1, 256)

    w3 = block_diag(wa3, wc3)                           # (256, 128)
    b3 = jnp.concatenate([ba3, bc3], axis=1)            # (1, 128)

    head = block_diag(wa4, wc4)                         # (128, 16)
    w4 = jnp.pad(head, ((0, 0), (0, OUT_LANES - (ACTION_DIM + 1))))
    b4 = jnp.pad(jnp.concatenate([ba4, bc4], axis=1),
                 ((0, 0), (0, OUT_LANES - (ACTION_DIM + 1))))
    return (w1, b1, w2, b2, w3, b3, w4, b4)


def actor_critic_forward(state, params, *, tm=None):
    """Runs actor (softmax probs) and critic (value) in one Pallas kernel.

    state: (B, STATE_DIM) float32
    returns: probs (B, ACTION_DIM) float32, value (B, 1) float32
    """
    B = state.shape[0]
    fused = _fuse_params(params)

    # Batch tile: large enough to hide DMA / per-step overhead, small enough
    # to stay well under v7x's 32 MiB default scoped VMEM limit.
    if tm is None:
        tm = 512 if B >= 512 else max(8, ((B + 7) // 8) * 8)
    num_tiles = pl.cdiv(B, tm)
    b_pad = num_tiles * tm
    if b_pad != B:
        state_p = jnp.zeros((b_pad, STATE_DIM), state.dtype).at[:B].set(state)
    else:
        state_p = state

    x_spec = pl.BlockSpec((tm, STATE_DIM), lambda i: (i, 0))
    out_spec = pl.BlockSpec((tm, OUT_LANES), lambda i: (i, 0))
    # Weights/biases: whole-array blocks with a constant index_map so they are
    # fetched once and remain resident across the batch grid.
    w_specs = [pl.BlockSpec(p.shape, lambda i: (0, 0)) for p in fused]

    out = pl.pallas_call(
        _actor_critic_kernel,
        out_shape=jax.ShapeDtypeStruct((b_pad, OUT_LANES), jnp.float32),
        grid_spec=pltpu.PrefetchScalarGridSpec(
            num_scalar_prefetch=0,
            grid=(num_tiles,),
            in_specs=[x_spec] + w_specs,
            out_specs=out_spec,
        ),
        compiler_params=pltpu.CompilerParams(
            dimension_semantics=("parallel",)),
    )(state_p, *fused)

    probs = out[:B, :ACTION_DIM]
    value = out[:B, ACTION_DIM:ACTION_DIM + 1]
    return probs, value


def make_params(key):
    """Deterministic init mimicking torch.nn.Linear defaults:
    U(-1/sqrt(fan_in), 1/sqrt(fan_in)).  Weights stored as (in_dim, out_dim)."""
    actor_dims = [(STATE_DIM, 128), (128, 128), (128, 64), (64, ACTION_DIM)]
    critic_dims = [(STATE_DIM, 128), (128, 128), (128, 64), (64, 1)]
    params = []
    for (din, dout) in actor_dims + critic_dims:
        key, kw, kb = jax.random.split(key, 3)
        bound = 1.0 / jnp.sqrt(jnp.float32(din))
        w = jax.random.uniform(kw, (din, dout), jnp.float32, -bound, bound)
        b = jax.random.uniform(kb, (1, dout), jnp.float32, -bound, bound)
        params.append((w, b))
    return params


def apply_action_mask(state, probs):
    """Vectorized reproduction of the mask logic in act()/evaluate() (glue,
    plain JAX — data-dependent per-row control flow, not a kernel hot path)."""
    chunk_last = state[:, 20:25]          # (B, 5)
    buffer = state[:, 15:20]              # (B, 5)
    mask = jnp.repeat((chunk_last != 0.0).astype(probs.dtype), 3, axis=1)  # (B,15)
    zero_tail = (buffer[:, 0] <= 0.8) & (chunk_last[:, 0] != 0.0)          # (B,)
    tail_keep = jnp.where(zero_tail[:, None],
                          jnp.concatenate([jnp.ones((1, 3)), jnp.zeros((1, 12))],
                                          axis=1).astype(probs.dtype),
                          jnp.ones((1, ACTION_DIM), probs.dtype))
    masked = probs * (mask * tail_keep)
    # evaluate(): if a row sums to <= 0, set its first entry to 1.0
    row_sum = jnp.sum(masked, axis=-1, keepdims=True)
    fix = jnp.where(row_sum <= 0.0, 1.0, 0.0) * \
        jax.nn.one_hot(0, ACTION_DIM, dtype=probs.dtype)[None, :]
    return masked + fix


def reference_forward(state, params):
    """Pure-JAX reference of the same MLPs for a correctness check."""
    (wa1, ba1), (wa2, ba2), (wa3, ba3), (wa4, ba4), \
        (wc1, bc1), (wc2, bc2), (wc3, bc3), (wc4, bc4) = params
    h = jnp.maximum(state @ wa1 + ba1, 0.0)
    h = jnp.tanh(h @ wa2 + ba2)
    h = jnp.maximum(h @ wa3 + ba3, 0.0)
    probs = jax.nn.softmax(h @ wa4 + ba4, axis=-1)
    c = jnp.maximum(state @ wc1 + bc1, 0.0)
    c = jnp.maximum(c @ wc2 + bc2, 0.0)
    c = jnp.maximum(c @ wc3 + bc3, 0.0)
    value = c @ wc4 + bc4
    return probs, value


# TODO(synk): Categorical sampling / log_prob / entropy from act()/evaluate()
# are distribution glue with no kernel hot path and are left to plain JAX.

if __name__ == "__main__":
    key = jax.random.PRNGKey(0)
    key, kp, ks = jax.random.split(key, 3)
    params = make_params(kp)

    B = 8
    state = jax.random.uniform(ks, (B, STATE_DIM), jnp.float32, 0.0, 1.0)

    probs, value = actor_critic_forward(state, params)
    masked_probs = apply_action_mask(state, probs)
    jax.block_until_ready((probs, value, masked_probs))

    # correctness check vs pure-JAX reference
    ref_probs, ref_value = reference_forward(state, params)
    assert probs.shape == (B, ACTION_DIM) and value.shape == (B, 1)
    # approx=True reciprocal in the softmax -> slightly loosened tolerance
    assert jnp.allclose(probs, ref_probs, atol=2e-3, rtol=2e-3)
    assert jnp.allclose(value, ref_value, atol=1e-4, rtol=1e-4)
    assert jnp.allclose(jnp.sum(probs, axis=-1), 1.0, atol=2e-3)

    print("KERNEL_OK")
</pallas_src>

<mosaic_0001>
module attributes {stable_mosaic.version = 11 : i64} {
  func.func @_actor_critic_kernel(%arg0: i32, %arg1: memref<8x30xf32, #tpu.memory_space<vmem>>, %arg2: memref<30x256xf32, #tpu.memory_space<vmem>>, %arg3: memref<1x256xf32, #tpu.memory_space<vmem>>, %arg4: memref<256x256xf32, #tpu.memory_space<vmem>>, %arg5: memref<1x256xf32, #tpu.memory_space<vmem>>, %arg6: memref<256x128xf32, #tpu.memory_space<vmem>>, %arg7: memref<1x128xf32, #tpu.memory_space<vmem>>, %arg8: memref<128x128xf32, #tpu.memory_space<vmem>>, %arg9: memref<1x128xf32, #tpu.memory_space<vmem>>, %arg10: memref<8x128xf32, #tpu.memory_space<vmem>>) attributes {dimension_semantics = [#tpu.dimension_semantics<parallel>], iteration_bounds = array<i64: 1>, scalar_prefetch = 0 : i64, scratch_operands = 0 : i64, tpu.core_type = #tpu.core_type<tc>, window_params = [{transform_indices = @transform_0, window_bounds = array<i64: 8, 30>}, {pipeline_mode = #tpu.pipeline_mode<synchronous>, transform_indices = @transform_1, window_bounds = array<i64: 30, 256>}, {pipeline_mode = #tpu.pipeline_mode<synchronous>, transform_indices = @transform_2, window_bounds = array<i64: 1, 256>}, {pipeline_mode = #tpu.pipeline_mode<synchronous>, transform_indices = @transform_3, window_bounds = array<i64: 256, 256>}, {pipeline_mode = #tpu.pipeline_mode<synchronous>, transform_indices = @transform_4, window_bounds = array<i64: 1, 256>}, {pipeline_mode = #tpu.pipeline_mode<synchronous>, transform_indices = @transform_5, window_bounds = array<i64: 256, 128>}, {pipeline_mode = #tpu.pipeline_mode<synchronous>, transform_indices = @transform_6, window_bounds = array<i64: 1, 128>}, {pipeline_mode = #tpu.pipeline_mode<synchronous>, transform_indices = @transform_7, window_bounds = array<i64: 128, 128>}, {pipeline_mode = #tpu.pipeline_mode<synchronous>, transform_indices = @transform_8, window_bounds = array<i64: 1, 128>}, {transform_indices = @transform_9, window_bounds = array<i64: 8, 128>}]} {
    %c0 = arith.constant 0 : index
    %c0_0 = arith.constant 0 : index
    %0 = vector.load %arg1[%c0, %c0_0] : memref<8x30xf32, #tpu.memory_space<vmem>>, vector<8x30xf32>
    %c0_1 = arith.constant 0 : index
    %c0_2 = arith.constant 0 : index
    %1 = vector.load %arg2[%c0_1, %c0_2] : memref<30x256xf32, #tpu.memory_space<vmem>>, vector<30x256xf32>
    %cst = arith.constant dense<0.000000e+00> : vector<8x256xf32>
    %2 = tpu.matmul %0, %1, %cst {dimension_numbers = #tpu.dot_dimension_numbers<[1], [0], [0], [1], [0, 0, 1, 1], [], []>} : vector<8x30xf32>, vector<30x256xf32>, vector<8x256xf32> -> vector<8x256xf32>
    %c0_3 = arith.constant 0 : index
    %c0_4 = arith.constant 0 : index
    %3 = vector.load %arg3[%c0_3, %c0_4] : memref<1x256xf32, #tpu.memory_space<vmem>>, vector<1x256xf32>
    %4 = vector.broadcast %3 : vector<1x256xf32> to vector<8x256xf32>
    %5 = arith.addf %2, %4 : vector<8x256xf32>
    %cst_5 = arith.constant 0.000000e+00 : f32
    %6 = vector.broadcast %cst_5 : f32 to vector<8x256xf32>
    %7 = arith.maximumf %5, %6 : vector<8x256xf32>
    %c0_6 = arith.constant 0 : index
    %c0_7 = arith.constant 0 : index
    %8 = vector.load %arg4[%c0_6, %c0_7] : memref<256x256xf32, #tpu.memory_space<vmem>>, vector<256x256xf32>
    %cst_8 = arith.constant dense<0.000000e+00> : vector<8x256xf32>
    %9 = tpu.matmul %7, %8, %cst_8 {dimension_numbers = #tpu.dot_dimension_numbers<[1], [0], [0], [1], [0, 0, 1, 1], [], []>} : vector<8x256xf32>, vector<256x256xf32>, vector<8x256xf32> -> vector<8x256xf32>
    %c0_9 = arith.constant 0 : index
    %c0_10 = arith.constant 0 : index
    %10 = vector.load %arg5[%c0_9, %c0_10] : memref<1x256xf32, #tpu.memory_space<vmem>>, vector<1x256xf32>
    %11 = vector.broadcast %10 : vector<1x256xf32> to vector<8x256xf32>
    %12 = arith.addf %9, %11 : vector<8x256xf32>
    %13 = vector.extract_strided_slice %12 {offsets = [0, 0], sizes = [8, 128], strides = [1, 1]} : vector<8x256xf32> to vector<8x128xf32>
    %14 = math.tanh %13 : vector<8x128xf32>
    %15 = vector.extract_strided_slice %12 {offsets = [0, 128], sizes = [8, 128], strides = [1, 1]} : vector<8x256xf32> to vector<8x128xf32>
    %cst_11 = arith.constant 0.000000e+00 : f32
    %16 = vector.broadcast %cst_11 : f32 to vector<8x128xf32>
    %17 = arith.maximumf %15, %16 : vector<8x128xf32>
    %18 = tpu.concatenate %14, %17 in 1 : vector<8x128xf32>, vector<8x128xf32> -> vector<8x256xf32>
    %c0_12 = arith.constant 0 : index
    %c0_13 = arith.constant 0 : index
    %19 = vector.load %arg6[%c0_12, %c0_13] : memref<256x128xf32, #tpu.memory_space<vmem>>, vector<256x128xf32>
    %cst_14 = arith.constant dense<0.000000e+00> : vector<8x128xf32>
    %20 = tpu.matmul %18, %19, %cst_14 {dimension_numbers = #tpu.dot_dimension_numbers<[1], [0], [0], [1], [0, 0, 1, 1], [], []>} : vector<8x256xf32>, vector<256x128xf32>, vector<8x128xf32> -> vector<8x128xf32>
    %c0_15 = arith.constant 0 : index
    %c0_16 = arith.constant 0 : index
    %21 = vector.load %arg7[%c0_15, %c0_16] : memref<1x128xf32, #tpu.memory_space<vmem>>, vector<1x128xf32>
    %22 = vector.broadcast %21 : vector<1x128xf32> to vector<8x128xf32>
    %23 = arith.addf %20, %22 : vector<8x128xf32>
    %cst_17 = arith.constant 0.000000e+00 : f32
    %24 = vector.broadcast %cst_17 : f32 to vector<8x128xf32>
    %25 = arith.maximumf %23, %24 : vector<8x128xf32>
    %c0_18 = arith.constant 0 : index
    %c0_19 = arith.constant 0 : index
    %26 = vector.load %arg8[%c0_18, %c0_19] : memref<128x128xf32, #tpu.memory_space<vmem>>, vector<128x128xf32>
    %cst_20 = arith.constant dense<0.000000e+00> : vector<8x128xf32>
    %27 = tpu.matmul %25, %26, %cst_20 {dimension_numbers = #tpu.dot_dimension_numbers<[1], [0], [0], [1], [0, 0, 1, 1], [], []>} : vector<8x128xf32>, vector<128x128xf32>, vector<8x128xf32> -> vector<8x128xf32>
    %c0_21 = arith.constant 0 : index
    %c0_22 = arith.constant 0 : index
    %28 = vector.load %arg9[%c0_21, %c0_22] : memref<1x128xf32, #tpu.memory_space<vmem>>, vector<1x128xf32>
    %29 = vector.broadcast %28 : vector<1x128xf32> to vector<8x128xf32>
    %30 = arith.addf %27, %29 : vector<8x128xf32>
    %31 = tpu.iota {dimensions = array<i32: 1>} : vector<8x128xi32>
    %c15_i32 = arith.constant 15 : i32
    %32 = vector.broadcast %c15_i32 : i32 to vector<8x128xi32>
    %33 = arith.cmpi slt, %31, %32 : vector<8x128xi32>
    %cst_23 = arith.constant 0xFF800000 : f32
    %34 = vector.broadcast %cst_23 : f32 to vector<8x128xf32>
    %35 = arith.select %33, %30, %34 : vector<8x128xi1>, vector<8x128xf32>
    %cst_24 = arith.constant dense<0xFF800000> : vector<8xf32>
    %36 = vector.multi_reduction <maximumf>, %35, %cst_24 [1] : vector<8x128xf32> to vector<8xf32>
    %37 = vector.shape_cast %36 : vector<8xf32> to vector<8x1xf32>
    %38 = vector.broadcast %37 : vector<8x1xf32> to vector<8x128xf32>
    %39 = arith.subf %30, %38 : vector<8x128xf32>
    %cst_25 = arith.constant 0xFF800000 : f32
    %40 = vector.broadcast %cst_25 : f32 to vector<8x128xf32>
    %41 = arith.select %33, %39, %40 : vector<8x128xi1>, vector<8x128xf32>
    %42 = math.exp %41 : vector<8x128xf32>
    %cst_26 = arith.constant dense<0.000000e+00> : vector<8xf32>
    %43 = vector.multi_reduction <add>, %42, %cst_26 [1] : vector<8x128xf32> to vector<8xf32>
    %44 = vector.shape_cast %43 : vector<8xf32> to vector<8x1xf32>
    %45 = tpu.reciprocal %44 {approx = true} : vector<8x1xf32> -> vector<8x1xf32>
    %46 = vector.broadcast %45 : vector<8x1xf32> to vector<8x128xf32>
    %47 = arith.mulf %42, %46 : vector<8x128xf32>
    %c15_i32_27 = arith.constant 15 : i32
    %48 = vector.broadcast %c15_i32_27 : i32 to vector<8x128xi32>
    %49 = arith.cmpi eq, %31, %48 : vector<8x128xi32>
    %cst_28 = arith.constant 0.000000e+00 : f32
    %50 = vector.broadcast %cst_28 : f32 to vector<8x128xf32>
    %51 = arith.select %49, %30, %50 : vector<8x128xi1>, vector<8x128xf32>
    %52 = arith.select %33, %47, %51 : vector<8x128xi1>, vector<8x128xf32>
    %c0_29 = arith.constant 0 : index
    %c0_30 = arith.constant 0 : index
    %53 = vector.load %arg10[%c0_29, %c0_30] : memref<8x128xf32, #tpu.memory_space<vmem>>, vector<8x128xf32>
    tpu.vector_store %arg10[%c0_29, %c0_30], %52 {strides = array<i32>} : memref<8x128xf32, #tpu.memory_space<vmem>>, vector<8x128xf32>,
    return
  }
  func.func @transform_0(%arg0: i32) -> (i32, i32) {
    %c0_i32 = arith.constant 0 : i32
    %c0_i32_0 = arith.constant 0 : i32
    return %arg0, %c0_i32 : i32, i32
  }
  func.func @transform_1(%arg0: i32) -> (i32, i32) {
    %c0_i32 = arith.constant 0 : i32
    %c0_i32_0 = arith.constant 0 : i32
    %c0_i32_1 = arith.constant 0 : i32
    return %c0_i32, %c0_i32_0 : i32, i32
  }
  func.func @transform_2(%arg0: i32) -> (i32, i32) {
    %c0_i32 = arith.constant 0 : i32
    %c0_i32_0 = arith.constant 0 : i32
    %c0_i32_1 = arith.constant 0 : i32
    return %c0_i32, %c0_i32_0 : i32, i32
  }
  func.func @transform_3(%arg0: i32) -> (i32, i32) {
    %c0_i32 = arith.constant 0 : i32
    %c0_i32_0 = arith.constant 0 : i32
    %c0_i32_1 = arith.constant 0 : i32
    return %c0_i32, %c0_i32_0 : i32, i32
  }
  func.func @transform_4(%arg0: i32) -> (i32, i32) {
    %c0_i32 = arith.constant 0 : i32
    %c0_i32_0 = arith.constant 0 : i32
    %c0_i32_1 = arith.constant 0 : i32
    return %c0_i32, %c0_i32_0 : i32, i32
  }
  func.func @transform_5(%arg0: i32) -> (i32, i32) {
    %c0_i32 = arith.constant 0 : i32
    %c0_i32_0 = arith.constant 0 : i32
    %c0_i32_1 = arith.constant 0 : i32
    return %c0_i32, %c0_i32_0 : i32, i32
  }
  func.func @transform_6(%arg0: i32) -> (i32, i32) {
    %c0_i32 = arith.constant 0 : i32
    %c0_i32_0 = arith.constant 0 : i32
    %c0_i32_1 = arith.constant 0 : i32
    return %c0_i32, %c0_i32_0 : i32, i32
  }
  func.func @transform_7(%arg0: i32) -> (i32, i32) {
    %c0_i32 = arith.constant 0 : i32
    %c0_i32_0 = arith.constant 0 : i32
    %c0_i32_1 = arith.constant 0 : i32
    return %c0_i32, %c0_i32_0 : i32, i32
  }
  func.func @transform_8(%arg0: i32) -> (i32, i32) {
    %c0_i32 = arith.constant 0 : i32
    %c0_i32_0 = arith.constant 0 : i32
    %c0_i32_1 = arith.constant 0 : i32
    return %c0_i32, %c0_i32_0 : i32, i32
  }
  func.func @transform_9(%arg0: i32) -> (i32, i32) {
    %c0_i32 = arith.constant 0 : i32
    %c0_i32_0 = arith.constant 0 : i32
    return %arg0, %c0_i32 : i32, i32
  }
}

</mosaic_0001>

<bundles_post_ra>
// kernel: tpu_custom_call.1
= control target key start
LH: loop header
LB: loop body
LE: loop exit
PB: predicated region body
PF: predicated region fallthrough
CT: control target
= control target key end

     0   :  { %14 = vsyncpa [#allocation3], 0  ;;  %s1155_s0 = inlined_call_operand.hbm [shape: f32[8,30], index: 0, kind: input, shape index: {}]   ;;  %s1156_s1 = inlined_call_operand.hbm [shape: f32[30,256], index: 1, kind: input, shape index: {}]   ;;  %s1157_s2 = inlined_call_operand.vmem [shape: f32[1,256], index: 2, kind: input, shape index: {}]   ;;  %s1158_s3 = inlined_call_operand.hbm [shape: f32[256,256], index: 3, kind: input, shape index: {}]   ;;  %s1159_s4 = inlined_call_operand.vmem [shape: f32[1,256], index: 4, kind: input, shape index: {}]   ;;  %s1160_s5 = inlined_call_operand.hbm [shape: f32[256,128], index: 5, kind: input, shape index: {}]   ;;  %s1161_s6 = inlined_call_operand.vmem [shape: f32[1,128], index: 6, kind: input, shape index: {}]   ;;  %s1162_s7 = inlined_call_operand.hbm [shape: f32[128,128], index: 7, kind: input, shape index: {}]   ;;  %s1163_s8 = inlined_call_operand.vmem [shape: f32[1,128], index: 8, kind: input, shape index: {}]   ;;  %s1164_s9 = inlined_call_operand.hbm [shape: f32[8,128], index: 9, kind: output, shape index: {}]  }
   0x1   :  { %15 = vsyncpa [#allocation6], 0 }
   0x2   :  { %16 = vsyncpa [#allocation9], 0 }
   0x3   :  { %17 = vsyncpa [#allocation4], 0  ;;  %s973_s30 = smov [#allocation5]   ;;  %s833_s13 = scalar_lea.hbm %s1156_s1, 1024 }
   0x4   :  { %s33_s10 = sshll.u32 %s973_s30, 4  ;;  %p834_p0 = scmp.ne.s32.totalorder %s1156_s1, %s833_s13  ;;  %s34_s10 = int_to_ptr.vmem [resolvable:$true] %s33_s10 }
   0x5   :  { %p837_p1 = scmp.lt.u32.totalorder %s833_s13, %s1156_s1 }
   0x7   :  { %p839_p2 = pnand %p837_p1, %p834_p0 }
   0x9   :  { %842 = shalt.err (!%p839_p2)
}
   0xa   :  { %s843_s18 = scalar_lea.vmem %s34_s10, 1024  ;;  %p848_p4 = scmp.lt.s32.totalorder %s34_s10, %s34_s10 }
   0xb   :  { %p844_p3 = scmp.ne.s32.totalorder %s34_s10, %s843_s18  ;;  %p849_p5 = scmp.lt.s32.totalorder %s843_s18, %s843_s18 }
   0xd   :  { %p850_p6 = por %p849_p5, %p848_p4 }
   0xf   :  { %p851_p7 = pnand %p850_p6, %p844_p3 }
  0x11   :  { %854 = shalt.err (!%p851_p7)
}
  0x12   :  { %s974_s19 = smov 256   ;;  %s975_s20 = smov 16  }
  0x13   :  { %39 = dma.hbm_to_vmem [thread:$0]  %s1156_s1, 1024, %s34_s10, [#allocation6], %s974_s19, %s974_s19, %s975_s20  }
  0x14   :  { %s976_s23 = smov [#allocation8]   ;;  %s855_s27 = scalar_lea.hbm %s1160_s5, 4096 }
  0x15   :  { %s61_s24 = sshll.u32 %s976_s23, 4  ;;  %p856_p8 = scmp.ne.s32.totalorder %s1160_s5, %s855_s27  ;;  %s62_s24 = int_to_ptr.vmem [resolvable:$true] %s61_s24 }
  0x16   :  { %p859_p9 = scmp.lt.u32.totalorder %s855_s27, %s1160_s5 }
  0x18   :  { %p861_p10 = pnand %p859_p9, %p856_p8 }
  0x1a   :  { %864 = shalt.err (!%p861_p10)
}
  0x1b   :  { %s865_s12 = scalar_lea.vmem %s62_s24, 4096  ;;  %p870_p12 = scmp.lt.s32.totalorder %s62_s24, %s62_s24 }
  0x1c   :  { %p866_p11 = scmp.ne.s32.totalorder %s62_s24, %s865_s12  ;;  %p871_p13 = scmp.lt.s32.totalorder %s865_s12, %s865_s12 }
  0x1e   :  { %p872_p0 = por %p871_p13, %p870_p12 }
  0x20   :  { %p873_p1 = pnand %p872_p0, %p866_p11 }
  0x22   :  { %876 = shalt.err (!%p873_p1)
}
  0x23   :  { %s977_s1 = smov 128   ;;  %s978_s10 = smov 8  }
  0x24   :  { %67 = dma.hbm_to_vmem [thread:$0]  %s1160_s5, 4096, %s62_s24, [#allocation9], %s977_s1, %s977_s1, %s978_s10  }
  0x25   :  { %s979_s15 = smov [#allocation2]   ;;  %s980_s17 = smov [#allocation7]  }
  0x26   :  { %s24_s16 = sshll.u32 %s979_s15, 4  ;;  %s47_s18 = sshll.u32 %s980_s17, 4  ;;  %s25_s16 = int_to_ptr.vmem [resolvable:$true] %s24_s16  ;;  %s1067_s18 = int_to_ptr.vmem [resolvable:$true] %s47_s18 }
  0x27   :  { %s877_s23 = scalar_lea.hbm %s1155_s0, 128 }
  0x28   :  { %p878_p2 = scmp.ne.s32.totalorder %s1155_s0, %s877_s23  ;;  %p881_p3 = scmp.lt.u32.totalorder %s877_s23, %s1155_s0 }
  0x2a   :  { %p883_p4 = pnand %p881_p3, %p878_p2 }
  0x2c   :  { %886 = shalt.err (!%p883_p4)
}
  0x2d   :  { %s887_s5 = scalar_lea.vmem %s25_s16, 128  ;;  %p892_p6 = scmp.lt.s32.totalorder %s25_s16, %s25_s16 }
  0x2e   :  { %p888_p5 = scmp.ne.s32.totalorder %s25_s16, %s887_s5  ;;  %p893_p7 = scmp.lt.s32.totalorder %s887_s5, %s887_s5 }
  0x30   :  { %p894_p8 = por %p893_p7, %p892_p6 }
  0x32   :  { %p895_p9 = pnand %p894_p8, %p888_p5 }
  0x34   :  { %898 = shalt.err (!%p895_p9)
}
  0x35   :  { %27 = dma.hbm_to_vmem [thread:$0]  %s1155_s0, 128, %s25_s16, [#allocation3]  }
  0x36   :  { %s899_s12 = scalar_lea.hbm %s1158_s3, 8192 }
  0x37   :  { %p900_p10 = scmp.ne.s32.totalorder %s1158_s3, %s899_s12  ;;  %p903_p11 = scmp.lt.u32.totalorder %s899_s12, %s1158_s3 }
  0x39   :  { %p905_p12 = pnand %p903_p11, %p900_p10 }
  0x3b   :  { %908 = shalt.err (!%p905_p12)
}
  0x3c   :  { %s909_s21 = scalar_lea.vmem %s1067_s18, 8192  ;;  %p914_p0 = scmp.lt.s32.totalorder %s1067_s18, %s1067_s18 }
  0x3d   :  { %p910_p13 = scmp.ne.s32.totalorder %s1067_s18, %s909_s21  ;;  %p915_p1 = scmp.lt.s32.totalorder %s909_s21, %s909_s21 }
  0x3f   :  { %p916_p2 = por %p915_p1, %p914_p0 }
  0x41   :  { %p917_p3 = pnand %p916_p2, %p910_p13 }
  0x43   :  { %920 = shalt.err (!%p917_p3)
}
  0x44   :  { %53 = dma.hbm_to_vmem [thread:$0]  %s1158_s3, 8192, %s1067_s18, [#allocation6], %s974_s19, %s974_s19, %s975_s20  }
  0x45   :  { %s981_s22 = smov [#allocation10]   ;;  %s921_s27 = scalar_lea.hbm %s1162_s7, 2048 }
  0x46   :  { %s75_s23 = sshll.u32 %s981_s22, 4  ;;  %p922_p4 = scmp.ne.s32.totalorder %s1162_s7, %s921_s27  ;;  %s76_s23 = int_to_ptr.vmem [resolvable:$true] %s75_s23 }
  0x47   :  { %p925_p5 = scmp.lt.u32.totalorder %s921_s27, %s1162_s7 }
  0x49   :  { %p927_p6 = pnand %p925_p5, %p922_p4 }
  0x4b   :  { %930 = shalt.err (!%p927_p6)
}
  0x4c   :  { %s931_s30 = scalar_lea.vmem %s76_s23, 2048  ;;  %p936_p8 = scmp.lt.s32.totalorder %s76_s23, %s76_s23 }
  0x4d   :  { %p932_p7 = scmp.ne.s32.totalorder %s76_s23, %s931_s30  ;;  %p937_p9 = scmp.lt.s32.totalorder %s931_s30, %s931_s30 }
  0x4f   :  { %p938_p10 = por %p937_p9, %p936_p8 }
  0x51   :  { %p939_p11 = pnand %p938_p10, %p932_p7 }
  0x53   :  { %942 = shalt.err (!%p939_p11)
}
  0x54   :  { %81 = dma.hbm_to_vmem [thread:$0]  %s1162_s7, 2048, %s76_s23, [#allocation9], %s977_s1, %s977_s1, %s978_s10  }
  0x55   :  { %965 = dma.done.wait [#allocation3], 128  }
  0x56   :  { %966 = vsyncadd [#allocation3], 4294967168 }
  0x57   :  { %967 = dma.done.wait [#allocation6], 9216  }
  0x58   :  { %968 = vsyncadd [#allocation6], 4294958080 }
  0x59   :  { %969 = dma.done.wait [#allocation9], 6144  }
  0x5a   :  { %970 = vsyncadd [#allocation9], 4294961152  ;;  %v982_v0 = vmov 0.0   ;;  %vm124_vm0 = vcmask 1045504   ;;  %v101_v1 = vld [vmem:[#allocation5 + $0x8] sm:$0xff]  ;;  %v103_v2 = vld [vmem:[#allocation5 + $0x18] sm:$0xff] }
  0x5b   :  { %195 = vmatprep.mubr.f32.mxu0 %v982_v0  ;;  %v100_v3 = vld [vmem:[#allocation5] sm:$0xff]  ;;  %v683_v4 = vpack.c.bf16 %v103_v2, %v101_v1  ;;  %v102_v5 = vld [vmem:[#allocation5 + $0x10] sm:$0xff]  ;;  %v105_v6 = vld [vmem:[#allocation5 + $0x28] sm:$0xff]  ;;  %vm983_vm1 = vmmov 1   ;;  %vm120_vm3 = vcmask 244736   ;;  %vm985_vm4 = vmmov 0  }
  0x5c   :  { %v107_v7 = vld [vmem:[#allocation5 + $0x38] sm:$0x3f]  ;;  %v685_v8 = vpack.c.bf16 %v102_v5, %v100_v3  ;;  %vm1117_vm2 = vmpackc.low %vm124_vm0, %vm983_vm1  ;;  %v104_v11 = vld [vmem:[#allocation5 + $0x20] sm:$0xff] }
  0x5d   :  { %v687_v9 = vpack.c.bf16 %v107_v7, %v105_v6  ;;  %v106_v12 = vld [vmem:[#allocation5 + $0x30] sm:$0x3f]  ;;  %684 = vmatprep.subr.bf16.mxu0 %v683_v4  ;;  %v205_v13 = vld [vmem:[#allocation7 + $0x8] sm:$0xff]  ;;  %v207_v14 = vld [vmem:[#allocation7 + $0x18] sm:$0xff] }
  0x5e   :  { %v204_v15 = vld [vmem:[#allocation7] sm:$0xff]  ;;  %686 = vmatpush1.bf16.msra.mxu0 %v685_v8  ;;  %v690_v16 = vpack.c.bf16 %v106_v12, %v104_v11  ;;  %v693_v17 = vpack.c.bf16 %v207_v14, %v205_v13  ;;  %v206_v18 = vld [vmem:[#allocation7 + $0x10] sm:$0xff]  ;;  %v209_v19 = vld [vmem:[#allocation7 + $0x28] sm:$0xff] }
  0x5f   :  { %v211_v20 = vld [vmem:[#allocation7 + $0x38] sm:$0xff]  ;;  %689 = vmatprep.subr.msk.bf16.mxu0 %vm1117_vm2, %v687_v9  ;;  %v695_v21 = vpack.c.bf16 %v206_v18, %v204_v15  ;;  %v208_v23 = vld [vmem:[#allocation7 + $0x20] sm:$0xff]  ;;  %v210_v24 = vld [vmem:[#allocation7 + $0x30] sm:$0xff] }
  0x60   :  { %v697_v22 = vpack.c.bf16 %v211_v20, %v209_v19  ;;  %v213_v25 = vld [vmem:[#allocation7 + $0x48] sm:$0xff]  ;;  %694 = vmatprep.subr.bf16.mxu1 %v693_v17  ;;  %v215_v26 = vld [vmem:[#allocation7 + $0x58] sm:$0xff]  ;;  %v699_v27 = vpack.c.bf16 %v210_v24, %v208_v23  ;;  %v212_v30 = vld [vmem:[#allocation7 + $0x40] sm:$0xff] }
  0x61   :  { %696 = vmatpush1.bf16.msra.mxu1 %v695_v21  ;;  %v99_v28 = vld [vmem:[#allocation2] sm:$0xff]  ;;  %v701_v29 = vpack.c.bf16 %v215_v26, %v213_v25  ;;  %v214_v31 = vld [vmem:[#allocation7 + $0x50] sm:$0xff]  ;;  %v217_v32 = vld [vmem:[#allocation7 + $0x68] sm:$0xff] }
  0x62   :  { %692 = vmatpush1.bf16.msk.msra.mxu0 %vm1117_vm2, %v690_v16  ;;  %698 = vmatprep.subr.bf16.mxu1 %v697_v22  ;;  %v219_v33 = vld [vmem:[#allocation7 + $0x78] sm:$0xff]  ;;  %v703_v34 = vpack.c.bf16 %v214_v31, %v212_v30  ;;  %v216_v36 = vld [vmem:[#allocation7 + $0x60] sm:$0xff]  ;;  %v218_v37 = vld [vmem:[#allocation7 + $0x70] sm:$0xff] }
  0x63   :  { %v705_v35 = vpack.c.bf16 %v219_v33, %v217_v32  ;;  %v221_v38 = vld [vmem:[#allocation7 + $0x88] sm:$0xff]  ;;  %v223_v39 = vld [vmem:[#allocation7 + $0x98] sm:$0xff]  ;;  %v707_v40 = vpack.c.bf16 %v218_v37, %v216_v36  ;;  %v220_v42 = vld [vmem:[#allocation7 + $0x80] sm:$0xff] }
  0x64   :  { %v709_v41 = vpack.c.bf16 %v223_v39, %v221_v38  ;;  %v222_v43 = vld [vmem:[#allocation7 + $0x90] sm:$0xff]  ;;  %v225_v44 = vld [vmem:[#allocation7 + $0xa8] sm:$0xff]  ;;  %v227_v45 = vld [vmem:[#allocation7 + $0xb8] sm:$0xff] }
  0x65   :  { %593 = vmatmul.mubr.msk.f32.vlgmr.msra.gmra.mrb[0].mxu0 %vm120_vm3, %v99_v28  ;;  %700 = vmatpush1.bf16.msra.mxu1 %v699_v27  ;;  %v711_v46 = vpack.c.bf16 %v222_v43, %v220_v42  ;;  %v713_v47 = vpack.c.bf16 %v227_v45, %v225_v44  ;;  %v224_v48 = vld [vmem:[#allocation7 + $0xa0] sm:$0xff]  ;;  %v226_v49 = vld [vmem:[#allocation7 + $0xb0] sm:$0xff]  ;;  %v229_v50 = vld [vmem:[#allocation7 + $0xc8] sm:$0xff] }
  0x66   :  { %702 = vmatprep.subr.bf16.mxu1 %v701_v29  ;;  %v231_v51 = vld [vmem:[#allocation7 + $0xd8] sm:$0xff]  ;;  %v715_v52 = vpack.c.bf16 %v226_v49, %v224_v48  ;;  %v228_v54 = vld [vmem:[#allocation7 + $0xc0] sm:$0xff]  ;;  %v230_v55 = vld [vmem:[#allocation7 + $0xd0] sm:$0xff] }
  0x67   :  { %v717_v53 = vpack.c.bf16 %v231_v51, %v229_v50  ;;  %v233_v56 = vld [vmem:[#allocation7 + $0xe8] sm:$0xff]  ;;  %v235_v57 = vld [vmem:[#allocation7 + $0xf8] sm:$0xff]  ;;  %v719_v58 = vpack.c.bf16 %v230_v55, %v228_v54  ;;  %v232_v60 = vld [vmem:[#allocation7 + $0xe0] sm:$0xff] }
  0x68   :  { %v721_v59 = vpack.c.bf16 %v235_v57, %v233_v56  ;;  %v234_v61 = vld [vmem:[#allocation7 + $0xf0] sm:$0xff]  ;;  %v237_v62 = vld [vmem:[#allocation7 + $0x108] sm:$0xff]  ;;  %v239_v63 = vld [vmem:[#allocation7 + $0x118] sm:$0xff] }
  0x69   :  { %704 = vmatpush1.bf16.msra.mxu1 %v703_v34  ;;  %v723_v1 = vpack.c.bf16 %v234_v61, %v232_v60  ;;  %v725_v2 = vpack.c.bf16 %v239_v63, %v237_v62  ;;  %v236_v3 = vld [vmem:[#allocation7 + $0x100] sm:$0xff]  ;;  %v238_v4 = vld [vmem:[#allocation7 + $0x110] sm:$0xff]  ;;  %v241_v5 = vld [vmem:[#allocation7 + $0x128] sm:$0xff] }
  0x6a   :  { %706 = vmatprep.subr.bf16.mxu1 %v705_v35  ;;  %v243_v6 = vld [vmem:[#allocation7 + $0x138] sm:$0xff]  ;;  %v727_v7 = vpack.c.bf16 %v238_v4, %v236_v3  ;;  %v240_v9 = vld [vmem:[#allocation7 + $0x120] sm:$0xff]  ;;  %v242_v10 = vld [vmem:[#allocation7 + $0x130] sm:$0xff] }
  0x6b   :  { %v729_v8 = vpack.c.bf16 %v243_v6, %v241_v5  ;;  %v245_v11 = vld [vmem:[#allocation7 + $0x148] sm:$0xff]  ;;  %v247_v12 = vld [vmem:[#allocation7 + $0x158] sm:$0xff]  ;;  %v731_v13 = vpack.c.bf16 %v242_v10, %v240_v9  ;;  %v244_v15 = vld [vmem:[#allocation7 + $0x140] sm:$0xff] }
  0x6c   :  { %v733_v14 = vpack.c.bf16 %v247_v12, %v245_v11  ;;  %v246_v16 = vld [vmem:[#allocation7 + $0x150] sm:$0xff]  ;;  %v249_v17 = vld [vmem:[#allocation7 + $0x168] sm:$0xff]  ;;  %v251_v18 = vld [vmem:[#allocation7 + $0x178] sm:$0xff] }
  0x6d   :  { %708 = vmatpush1.bf16.msra.mxu1 %v707_v40  ;;  %v735_v19 = vpack.c.bf16 %v246_v16, %v244_v15  ;;  %v737_v20 = vpack.c.bf16 %v251_v18, %v249_v17  ;;  %v248_v21 = vld [vmem:[#allocation7 + $0x160] sm:$0xff]  ;;  %v250_v22 = vld [vmem:[#allocation7 + $0x170] sm:$0xff]  ;;  %v253_v23 = vld [vmem:[#allocation7 + $0x188] sm:$0xff]  ;;  %v110_v15 = vlaneseq }
  0x6e   :  { %710 = vmatprep.subr.bf16.mxu1 %v709_v41  ;;  %v255_v24 = vld [vmem:[#allocation7 + $0x198] sm:$0xff]  ;;  %v739_v25 = vpack.c.bf16 %v250_v22, %v248_v21  ;;  %v252_v27 = vld [vmem:[#allocation7 + $0x180] sm:$0xff]  ;;  %v254_v28 = vld [vmem:[#allocation7 + $0x190] sm:$0xff] }
  0x6f   :  { %v741_v26 = vpack.c.bf16 %v255_v24, %v253_v23  ;;  %v257_v29 = vld [vmem:[#allocation7 + $0x1a8] sm:$0xff]  ;;  %v259_v30 = vld [vmem:[#allocation7 + $0x1b8] sm:$0xff]  ;;  %v743_v31 = vpack.c.bf16 %v254_v28, %v252_v27  ;;  %v256_v33 = vld [vmem:[#allocation7 + $0x1a0] sm:$0xff]  ;;  %v111_v16 = vshrl.u32 %v110_v15, 7 }
  0x70   :  { %v745_v32 = vpack.c.bf16 %v259_v30, %v257_v29  ;;  %v258_v34 = vld [vmem:[#allocation7 + $0x1b0] sm:$0xff]  ;;  %v261_v35 = vld [vmem:[#allocation7 + $0x1c8] sm:$0xff]  ;;  %v263_v36 = vld [vmem:[#allocation7 + $0x1d8] sm:$0xff] }
  0x71   :  { %712 = vmatpush1.bf16.msra.mxu1 %v711_v46  ;;  %v747_v37 = vpack.c.bf16 %v258_v34, %v256_v33  ;;  %v749_v38 = vpack.c.bf16 %v263_v36, %v261_v35  ;;  %v260_v39 = vld [vmem:[#allocation7 + $0x1c0] sm:$0xff]  ;;  %v262_v40 = vld [vmem:[#allocation7 + $0x1d0] sm:$0xff]  ;;  %v265_v42 = vld [vmem:[#allocation7 + $0x1e8] sm:$0xff]  ;;  %v112_v17 = vsub.s32 0, %v111_v16 }
  0x72   :  { %714 = vmatprep.subr.bf16.mxu1 %v713_v47  ;;  %v751_v41 = vpack.c.bf16 %v262_v40, %v260_v39  ;;  %v267_v43 = vld [vmem:[#allocation7 + $0x1f8] sm:$0xff]  ;;  %v264_v45 = vld [vmem:[#allocation7 + $0x1e0] sm:$0xff]  ;;  %v266_v46 = vld [vmem:[#allocation7 + $0x1f0] sm:$0xff] }
  0x73   :  { %v753_v44 = vpack.c.bf16 %v267_v43, %v265_v42  ;;  %v755_v47 = vpack.c.bf16 %v266_v46, %v264_v45  ;;  %v369_v48 = vld [vmem:[#allocation8 + $0x80] sm:$0xff]  ;;  %v370_v49 = vld [vmem:[#allocation8 + $0x88] sm:$0xff]  ;;  %v372_v54 = vld [vmem:[#allocation8 + $0x98] sm:$0xff]  ;;  %v984_v46 = vmov 0.0|0.0  }
  0x74   :  { %v353_v50 = vld [vmem:[#allocation8] sm:$0xff]  ;;  %v757_v51 = vpack.c.bf16 %v370_v49, %v369_v48  ;;  %v355_v57 = vld [vmem:[#allocation8 + $0x10] sm:$0xff]  ;;  %v374_v60 = vld [vmem:[#allocation8 + $0xa8] sm:$0xff] }
  0x75   :  { %716 = vmatpush1.bf16.msra.mxu1 %v715_v52  ;;  %v354_v52 = vld [vmem:[#allocation8 + $0x8] sm:$0xff]  ;;  %v357_v63 = vld [vmem:[#allocation8 + $0x20] sm:$0xff]  ;;  %v376_v3 = vld [vmem:[#allocation8 + $0xb8] sm:$0xff] }
  0x76   :  { %718 = vmatprep.subr.bf16.mxu1 %v717_v53  ;;  %v371_v53 = vld [vmem:[#allocation8 + $0x90] sm:$0xff]  ;;  %v759_v55 = vpack.c.bf16 %v354_v52, %v353_v50  ;;  %758 = vmatprep.subr.bf16.mxu0 %v757_v51  ;;  %v378_v9 = vld [vmem:[#allocation8 + $0xc8] sm:$0xff]  ;;  %v361_v12 = vld [vmem:[#allocation8 + $0x40] sm:$0xff] }
  0x77   :  { %v761_v56 = vpack.c.bf16 %v372_v54, %v371_v53  ;;  %v359_v6 = vld [vmem:[#allocation8 + $0x30] sm:$0xff]  ;;  %v108_v18 = vld [vmem:[%s1157_s2] sm:$0x3]  ;;  %v381_v34 = vld [vmem:[#allocation8 + $0xe0] sm:$0xff] }
  0x78   :  { %760 = vmatpush3.bf16.msra.mxu0 %v759_v55  ;;  %v379_v28 = vld [vmem:[#allocation8 + $0xd0] sm:$0xff]  ;;  %v380_v29 = vld [vmem:[#allocation8 + $0xd8] sm:$0xff]  ;;  %v382_v35 = vld [vmem:[#allocation8 + $0xe8] sm:$0xff] }
  0x79   :  { %720 = vmatpush1.bf16.msra.mxu1 %v719_v58  ;;  %v356_v58 = vld [vmem:[#allocation8 + $0x18] sm:$0xff]  ;;  %762 = vmatprep.subr.bf16.mxu0 %v761_v56  ;;  %v777_v30 = vpack.c.bf16 %v380_v29, %v379_v28  ;;  %v781_v36 = vpack.c.bf16 %v382_v35, %v381_v34  ;;  %v383_v40 = vld [vmem:[#allocation8 + $0xf0] sm:$0xff]  ;;  %v463_v55 = vld [vmem:[#allocation10] sm:$0xff] }
  0x7a   :  { %722 = vmatprep.subr.bf16.mxu1 %v721_v59  ;;  %v373_v59 = vld [vmem:[#allocation8 + $0xa0] sm:$0xff]  ;;  %v763_v61 = vpack.c.bf16 %v356_v58, %v355_v57  ;;  %v367_v42 = vld [vmem:[#allocation8 + $0x70] sm:$0xff]  ;;  %v464_v56 = vld [vmem:[#allocation10 + $0x8] sm:$0xff] }
  0x7b   :  { %v765_v62 = vpack.c.bf16 %v374_v60, %v373_v59  ;;  %v790_v57 = vpack.c.bf16 %v464_v56, %v463_v55  ;;  %v465_v58 = vld [vmem:[#allocation10 + $0x10] sm:$0xff]  ;;  %v466_v59 = vld [vmem:[#allocation10 + $0x18] sm:$0xff] }
  0x7c   :  { %764 = vmatpush3.bf16.msra.mxu0 %v763_v61  ;;  %v793_v61 = vpack.c.bf16 %v466_v59, %v465_v58 }
  0x7d   :  { %724 = vmatpush1.bf16.msra.mxu1 %v723_v1  ;;  %v358_v1 = vld [vmem:[#allocation8 + $0x28] sm:$0xff]  ;;  %766 = vmatprep.subr.bf16.mxu0 %v765_v62  ;;  %v467_v62 = vld [vmem:[#allocation10 + $0x20] sm:$0xff] }
  0x7e   :  { %726 = vmatprep.subr.bf16.mxu1 %v725_v2  ;;  %v375_v2 = vld [vmem:[#allocation8 + $0xb0] sm:$0xff]  ;;  %v767_v4 = vpack.c.bf16 %v358_v1, %v357_v63  ;;  %v468_v63 = vld [vmem:[#allocation10 + $0x28] sm:$0xff] }
  0x7f   :  { %v769_v5 = vpack.c.bf16 %v376_v3, %v375_v2  ;;  %v796_v1 = vpack.c.bf16 %v468_v63, %v467_v62  ;;  %v469_v2 = vld [vmem:[#allocation10 + $0x30] sm:$0xff]  ;;  %v470_v3 = vld [vmem:[#allocation10 + $0x38] sm:$0xff] }
  0x80   :  { %768 = vmatpush3.bf16.msra.mxu0 %v767_v4  ;;  %v799_v4 = vpack.c.bf16 %v470_v3, %v469_v2 }
  0x81   :  { %728 = vmatpush1.bf16.msra.mxu1 %v727_v7  ;;  %v360_v7 = vld [vmem:[#allocation8 + $0x38] sm:$0xff]  ;;  %770 = vmatprep.subr.bf16.mxu0 %v769_v5  ;;  %v471_v5 = vld [vmem:[#allocation10 + $0x40] sm:$0xff] }
  0x82   :  { %730 = vmatprep.subr.bf16.mxu1 %v729_v8  ;;  %v377_v8 = vld [vmem:[#allocation8 + $0xc0] sm:$0xff]  ;;  %v771_v10 = vpack.c.bf16 %v360_v7, %v359_v6  ;;  %v472_v6 = vld [vmem:[#allocation10 + $0x48] sm:$0xff] }
  0x83   :  { %v773_v11 = vpack.c.bf16 %v378_v9, %v377_v8  ;;  %v802_v7 = vpack.c.bf16 %v472_v6, %v471_v5  ;;  %v473_v8 = vld [vmem:[#allocation10 + $0x50] sm:$0xff]  ;;  %v474_v9 = vld [vmem:[#allocation10 + $0x58] sm:$0xff] }
  0x84   :  { %772 = vmatpush3.bf16.msra.mxu0 %v771_v10  ;;  %v805_v10 = vpack.c.bf16 %v474_v9, %v473_v8 }
  0x85   :  { %732 = vmatpush1.bf16.msra.mxu1 %v731_v13  ;;  %v362_v13 = vld [vmem:[#allocation8 + $0x48] sm:$0xff]  ;;  %774 = vmatprep.subr.bf16.mxu0 %v773_v11  ;;  %v475_v11 = vld [vmem:[#allocation10 + $0x60] sm:$0xff] }
  0x86   :  { %734 = vmatprep.subr.bf16.mxu1 %v733_v14  ;;  %v775_v14 = vpack.c.bf16 %v362_v13, %v361_v12  ;;  %v476_v12 = vld [vmem:[#allocation10 + $0x68] sm:$0xff] }
  0x87   :  { %v808_v13 = vpack.c.bf16 %v476_v12, %v475_v11 }
  0x88   :  { %776 = vmatpush3.bf16.msra.mxu0 %v775_v14  ;;  %v477_v14 = vld [vmem:[#allocation10 + $0x70] sm:$0xff] }
  0x89   :  { %736 = vmatpush1.bf16.msra.mxu1 %v735_v19  ;;  %v116_v19 = vsub.s32 1, %v111_v16  ;;  %778 = vmatprep.subr.bf16.mxu0 %v777_v30  ;;  %v478_v16 = vld [vmem:[#allocation10 + $0x78] sm:$0xff] }
  0x8a   :  { %738 = vmatprep.subr.bf16.mxu1 %v737_v20  ;;  %v113_v20 = vrot.slane %v108_v18, %v112_v17 }
  0x8b   :  { %v117_v21 = vrot.slane %v108_v18, %v116_v19 }
  0x8d   :  { %740 = vmatpush1.bf16.msra.mxu1 %v739_v25 }
  0x8e   :  { %742 = vmatprep.subr.bf16.mxu1 %v741_v26 }
  0x91   :  { %744 = vmatpush1.bf16.msra.mxu1 %v743_v31  ;;  %v363_v31 = vld [vmem:[#allocation8 + $0x50] sm:$0xff] }
  0x92   :  { %746 = vmatprep.subr.bf16.mxu1 %v745_v32  ;;  %v364_v32 = vld [vmem:[#allocation8 + $0x58] sm:$0xff] }
  0x93   :  { %v779_v33 = vpack.c.bf16 %v364_v32, %v363_v31 }
  0x95   :  { %748 = vmatpush1.bf16.msra.mxu1 %v747_v37  ;;  %780 = vmatpush3.bf16.msra.mxu0 %v779_v33  ;;  %v365_v37 = vld [vmem:[#allocation8 + $0x60] sm:$0xff] }
  0x96   :  { %750 = vmatprep.subr.bf16.mxu1 %v749_v38  ;;  %v366_v38 = vld [vmem:[#allocation8 + $0x68] sm:$0xff]  ;;  %782 = vmatprep.subr.bf16.mxu0 %v781_v36 }
  0x97   :  { %v783_v39 = vpack.c.bf16 %v366_v38, %v365_v37 }
  0x99   :  { %752 = vmatpush1.bf16.msra.mxu1 %v751_v41  ;;  %v384_v41 = vld [vmem:[#allocation8 + $0xf8] sm:$0xff]  ;;  %784 = vmatpush3.bf16.msra.mxu0 %v783_v39 }
  0x9a   :  { %754 = vmatprep.subr.bf16.mxu1 %v753_v44  ;;  %v785_v43 = vpack.c.bf16 %v384_v41, %v383_v40  ;;  %v368_v44 = vld [vmem:[#allocation8 + $0x78] sm:$0xff] }
  0x9b   :  { %v787_v45 = vpack.c.bf16 %v368_v44, %v367_v42 }
  0x9c   :  { %786 = vmatprep.subr.bf16.mxu0 %v785_v43 }
  0x9d   :  { %756 = vmatpush1.bf16.msra.mxu1 %v755_v47  ;;  %788 = vmatpush3.bf16.msra.mxu0 %v787_v45  ;;  %v268_v47 = vld [vmem:[%s1159_s4] sm:$0x3] }
  0x9e   :  { %789 = vmatprep.subr.bf16.mxu0 %v984_v46  ;;  %v273_v48 = vrot.slane %v268_v47, %v112_v17  ;;  %v277_v49 = vrot.slane %v268_v47, %v116_v19  ;;  %v811_v17 = vpack.c.bf16 %v478_v16, %v477_v14  ;;  %v594_v19 = vld [vmem:[%s1161_s6] ss:$0 sm:$0xff]  ;;  %s986_s6 = smov [#allocation11]  }
 0x138   :  { %v197_v22 = vpop.f32.mrb[0].mxu0 }
 0x139   :  { %v198_v23 = vadd.f32 %v197_v22, %v113_v20  ;;  %v199_v24 = vpop.f32.mrb[1].mxu0 }
 0x13a   :  { %v200_v25 = vadd.f32 %v199_v24, %v117_v21  ;;  %v557_v24 = vand.u32 127, %v110_v15 }
 0x13b   :  { %v202_v27 = vmax.f32 %v198_v23, 0.0 }
 0x13c   :  { %v203_v26 = vmax.f32 %v200_v25, 0.0  ;;  %v595_v25 = vld [vmem:[%s1163_s8] ss:$0 sm:$0xff]  ;;  %vm558_vm5 = vcmp.lt.s32.totalorder %v557_v24, 15  ;;  %vm570_vm6 = vcmp.eq.s32.totalorder %v557_v24, 15  ;;  %s580_s8 = sshll.u32 %s986_s6, 4  ;;  %s581_s8 = int_to_ptr.vmem [resolvable:$true] %s580_s8 }
 0x13d   :  { %s943_s12 = scalar_lea.vmem %s581_s8, 128  ;;  %p948_p13 = scmp.lt.s32.totalorder %s581_s8, %s581_s8 }
 0x13e   :  { %344 = vmatprep.mubr.f32.mxu1 %v203_v26  ;;  %p944_p12 = scmp.ne.s32.totalorder %s581_s8, %s943_s12  ;;  %p949_p0 = scmp.lt.s32.totalorder %s943_s12, %s943_s12 }
 0x13f   :  { %345 = vmatmul.mubr.f32.vlgmr.msra.gmra.mrb[0].mxu1 %v202_v27 }
 0x140   :  { %p950_p1 = por %p949_p0, %p948_p13 }
 0x142   :  { %p951_p2 = pnand %p950_p1, %p944_p12 }
 0x212   :  { %v346_v50 = vpop.f32.mrb[0].mxu1 }
 0x213   :  { %v347_v51 = vadd.f32 %v346_v50, %v273_v48  ;;  %v348_v52 = vpop.f32.mrb[1].mxu1 }
 0x214   :  { %v349_v53 = vadd.f32 %v348_v52, %v277_v49 }
 0x215   :  { %827 = vtanh.f32 %v347_v51 }
 0x216   :  { %v352_v54 = vmax.f32 %v349_v53, 0.0 }
 0x218   :  { %456 = vmatprep.mubr.f32.mxu0 %v352_v54 }
 0x21f   :  { %v828_v60 = vpop.eup %827 }
 0x220   :  { %457 = vmatmul.mubr.f32.vlgmr.msra.gmra.mrb[2].mxu0 %v828_v60 }
 0x221   :  { %791 = vmatpush3.bf16.msra.mxu0 %v790_v57  ;;  %680 = vmatprep.mubr.msk.f32.mxu0 %vm985_vm4, %v982_v0 }
 0x222   :  { %792 = vmatprep.subr.bf16.mxu0 %v984_v46 }
 0x225   :  { %794 = vmatpush3.bf16.msra.mxu0 %v793_v61 }
 0x226   :  { %795 = vmatprep.subr.bf16.mxu0 %v984_v46 }
 0x229   :  { %797 = vmatpush3.bf16.msra.mxu0 %v796_v1 }
 0x22a   :  { %798 = vmatprep.subr.bf16.mxu0 %v984_v46 }
 0x22d   :  { %800 = vmatpush3.bf16.msra.mxu0 %v799_v4 }
 0x22e   :  { %801 = vmatprep.subr.bf16.mxu0 %v984_v46 }
 0x231   :  { %803 = vmatpush3.bf16.msra.mxu0 %v802_v7 }
 0x232   :  { %804 = vmatprep.subr.bf16.mxu0 %v984_v46 }
 0x235   :  { %806 = vmatpush3.bf16.msra.mxu0 %v805_v10 }
 0x236   :  { %807 = vmatprep.subr.bf16.mxu0 %v984_v46 }
 0x239   :  { %809 = vmatpush3.bf16.msra.mxu0 %v808_v13 }
 0x23a   :  { %810 = vmatprep.subr.bf16.mxu0 %v984_v46 }
 0x23d   :  { %812 = vmatpush3.bf16.msra.mxu0 %v811_v17 }
 0x2f3   :  { %v628_v18 = vpop.f32.mrb[2].mxu0 }
 0x2f4   :  { %v629_v20 = vpop.f32.mrb[3].mxu0 }
 0x2f5   :  { %v630_v21 = vadd.f32 %v629_v20, %v628_v18 }
 0x2f7   :  { %v459_v22 = vadd.f32 %v630_v21, %v594_v19 }
 0x2f9   :  { %v462_v23 = vmax.f32 %v459_v22, 0.0 }
 0x2fb   :  { %681 = vmatmul.mubr.f32.vlgmr.msra.gmra.mrb[4].mxu0 %v462_v23 }
 0x3ce   :  { %v552_v26 = vpop.f32.mrb[4].mxu0 }
 0x3cf   :  { %v553_v27 = vadd.f32 %v595_v25, %v552_v26  ;;  %v682_v0 = vpop.f32.mrb[5].mxu0 }
 0x3d1   :  { %v559_v28 = vsel %vm558_vm5, %v553_v27, -inf  ;;  %v571_v36 = vsel %vm570_vm6, %v553_v27, 0.0 }
 0x3d2   :  { %560 = vmax.xlane.f32.xlu0 %v559_v28 }
 0x45f   :  { %v561_v29 = vpop.xlane.xlu0 %560 }
 0x460   :  { %v562_v30 = vsub.f32 %v553_v27, %v561_v29 }
 0x462   :  { %v563_v31 = vsel %vm558_vm5, %v562_v30, -inf }
 0x463   :  { %v564_v32 = vmul.f32 1.442695, %v563_v31 }
 0x465   :  { %829 = vpow2.f32 %v564_v32 }
 0x46f   :  { %v830_v33 = vpop.eup %829 }
 0x470   :  { %566 = vadd.xlane.f32.xlu0 %v830_v33 }
 0x4fd   :  { %v567_v15 = vpop.xlane.xlu0 %566 }
 0x4fe   :  { %831 = vrcp.f32 %v567_v15 }
 0x508   :  { %v832_v34 = vpop.eup %831 }
 0x509   :  { %v569_v35 = vmul.f32 %v832_v34, %v830_v33 }
 0x50b   :  { %v572_v37 = vsel %vm558_vm5, %v569_v35, %v571_v36 }
 0x50c   :  { %573 = vst [vmem:[#allocation11] sm:$0xff] %v572_v37 }
 0x50d   :  { %954 = shalt.err (!%p951_p2)
}
 0x50e   :  { %s955_s15 = scalar_lea.hbm %s1164_s9, 128 }
 0x50f   :  { %p956_p3 = scmp.ne.s32.totalorder %s1164_s9, %s955_s15  ;;  %p959_p4 = scmp.lt.u32.totalorder %s955_s15, %s1164_s9 }
 0x511   :  { %p961_p5 = pnand %p959_p4, %p956_p3 }
 0x513   :  { %964 = shalt.err (!%p961_p5)
}
 0x514   :  { %583 = dma.vmem_to_hbm [thread:$0]  %s581_s8, 128, %s1164_s9, [#allocation4]  }
 0x515   :  { %971 = dma.done.wait [#allocation4], 128  }
 0x516   :  { %972 = vsyncadd [#allocation4], 4294967168 }
 0x517   :  { %587 = vsyncpa [#allocation3], 1 }
 0x518   :  { %588 = vsyncpa [#allocation6], 1 }
 0x519   :  { %589 = vsyncpa [#allocation9], 1 }
 0x51a   :  { %590 = vsyncpa [#allocation4], 1 }

</bundles_post_ra>
